<compile_context>
chip_gen: v5e
topology: v5e:2x2
jax: 0.10.0
libtpu: 0.0.40
codegen_flags: <defaults>
</compile_context>

<pallas_src>
import functools

import jax
import jax.numpy as jnp
from jax import lax
from jax.experimental import pallas as pl
from jax.experimental.pallas import tpu as pltpu


# ------------------------------ fused kernel ------------------------------- #

def _fused_forward_kernel(x_ref, w_ref, b_ref, selT_ref, wfc_ref, bfc_ref,
                          out_ref, col_ref, *, c, oc, ncls, kh, kw, wp, m):
    """x_ref   : (C, PAD + M + PAD)  channel-major, spatially zero-padded pixels (lane axis)
       w_ref   : (OC, K_pad)         conv weight; column (di*KW+dj)*C + c
       b_ref   : (OC, 1)             conv bias
       selT_ref: (M, N)              pooling selector: 1/HW on interior pixels of image n
       wfc_ref : (NCLS, OC)          classifier weight (torch layout)
       bfc_ref : (NCLS, 1)           classifier bias
       out_ref : (OC + NCLS, N)      rows [0,OC): L2-normalized descriptor (transposed)
                                     rows [OC,OC+NCLS): logits (transposed)
       col_ref : (K_pad, M)          VMEM scratch holding the im2col slab"""
    k = kh * kw * c
    k_pad = col_ref.shape[0]

    # --- self.features: conv3x3 as ONE K-deep matmul over an im2col slab + ReLU
    # Build the slab from statically lane-shifted copies of the padded input.
    for di in range(kh):
        for dj in range(kw):
            t = di * kw + dj
            start = di * wp + dj                      # static lane offset (guard pad folded in)
            col_ref[t * c:(t + 1) * c, :] = x_ref[:, start:start + m]
    if k_pad > k:                                     # zero the K-padding rows once
        col_ref[k:, :] = jnp.zeros((k_pad - k, m), jnp.float32)

    feat = jnp.dot(w_ref[...], col_ref[...], preferred_element_type=jnp.float32)
    feat = jnp.maximum(feat + b_ref[...], 0.0)        # (OC, M), lane-dense

    # --- self.pool: global average pool over interior pixels == one matmul
    # against the precomputed selector (spatial-padding rows select to zero).
    pooled = jnp.dot(feat, selT_ref[...], preferred_element_type=jnp.float32)   # (OC, N)

    # --- self.fc_cls (on the UN-normalized pooled features)
    cls_t = jnp.dot(wfc_ref[...], pooled,
                    preferred_element_type=jnp.float32) + bfc_ref[...]          # (NCLS, N)

    # --- self.norm: L2N, x / (||x||_2 + eps) over channels
    nrm = jnp.sqrt(jnp.sum(pooled * pooled, axis=0, keepdims=True)) + 1e-6      # (1, N)
    o_t = pooled / nrm                                                          # (OC, N)

    # Single merged output slab -> one output DMA.
    out_ref[0:oc, :] = o_t
    out_ref[oc:oc + ncls, :] = cls_t


# -------------------------------- wrapper ----------------------------------- #

def image_retrieval_net_forward(x_nchw, conv_w, conv_b, fc_w, fc_b):
    N, C, H, W = x_nchw.shape
    OC, _, KH, KW = conv_w.shape
    NCLS = fc_w.shape[0]
    assert KH % 2 == 1 and KW % 2 == 1, "SAME-padding construction assumes odd kernel size"

    Hp, Wp = H + KH - 1, W + KW - 1                  # spatially zero-padded extents
    M = N * Hp * Wp                                  # pixel (lane) axis length
    PAD = (KH // 2) * Wp + (KW // 2)                 # guard columns for the largest lane shift
    K = KH * KW * C
    K_PAD = ((K + 7) // 8) * 8                       # sublane-multiple contraction depth

    f32 = jnp.float32
    # NCHW -> NHWC -> spatial zero pad -> channel-major (C, M) with lane guard padding.
    x_sp = jnp.pad(jnp.transpose(x_nchw, (0, 2, 3, 1)).astype(f32),
                   ((0, 0), (KH // 2, KH // 2), (KW // 2, KW // 2), (0, 0)))
    x_cm = x_sp.reshape(M, C).T                      # (C, M) lane-dense pixels
    x_in = jnp.pad(x_cm, ((0, 0), (PAD, PAD)))       # (C, PAD + M + PAD)

    # Conv weight as (OC, K): column index (di*KW+dj)*C + c  ==  conv_w[oc, c, di, dj].
    w_cat = jnp.transpose(conv_w, (0, 2, 3, 1)).reshape(OC, K).astype(f32)
    w_cat = jnp.pad(w_cat, ((0, 0), (0, K_PAD - K)))
    b_col = conv_b.reshape(OC, 1).astype(f32)

    # Precomputed pooling selector: selT[p, n] = 1/HW iff padded pixel p is interior of image n.
    per_img = jnp.zeros((Hp, Wp), f32).at[KH // 2:KH // 2 + H,
                                          KW // 2:KW // 2 + W].set(1.0 / (H * W))
    selT = jnp.kron(jnp.eye(N, dtype=f32), per_img.reshape(-1, 1))   # (M, N)

    wfc = fc_w.astype(f32)                           # (NCLS, OC)  (torch layout as-is)
    bfc = fc_b.reshape(NCLS, 1).astype(f32)

    kern = functools.partial(_fused_forward_kernel,
                             c=C, oc=OC, ncls=NCLS, kh=KH, kw=KW, wp=Wp, m=M)

    out_t = pl.pallas_call(
        kern,
        out_shape=jax.ShapeDtypeStruct((OC + NCLS, N), f32),
        in_specs=[pl.BlockSpec(memory_space=pltpu.MemorySpace.VMEM)] * 6,
        out_specs=pl.BlockSpec(memory_space=pltpu.MemorySpace.VMEM),
        scratch_shapes=[pltpu.VMEM((K_PAD, M), f32)],
    )(x_in, w_cat, b_col, selT, wfc, bfc)

    o = out_t[:OC, :].T                              # (N, OC)  L2-normalized descriptor
    cls = out_t[OC:, :].T                            # (N, NCLS) logits
    return o, cls


# ----------------------------- JAX reference -------------------------------- #

def _reference_forward(x_nchw, conv_w, conv_b, fc_w, fc_b):
    y = lax.conv_general_dilated(
        x_nchw, conv_w, window_strides=(1, 1), padding="SAME",
        dimension_numbers=("NCHW", "OIHW", "NCHW"))
    y = jnp.maximum(y + conv_b[None, :, None, None], 0.0)
    pooled = jnp.mean(y, axis=(2, 3))                                 # (N, C)
    cls = pooled @ fc_w.T + fc_b
    o = pooled / (jnp.sqrt(jnp.sum(pooled * pooled, axis=-1, keepdims=True)) + 1e-6)
    return o, cls


# --------------------------------- main -------------------------------------- #

if __name__ == "__main__":
    key = jax.random.PRNGKey(0)
    k_x, k_cw, k_cb, k_fw, k_fb = jax.random.split(key, 5)

    N, C_IN, H, W = 2, 4, 16, 16
    C_OUT, KH, KW = 32, 3, 3
    NCLS = 8

    x = jax.random.normal(k_x, (N, C_IN, H, W), dtype=jnp.float32)
    conv_w = 0.1 * jax.random.normal(k_cw, (C_OUT, C_IN, KH, KW), dtype=jnp.float32)
    conv_b = 0.1 * jax.random.normal(k_cb, (C_OUT,), dtype=jnp.float32)
    fc_w = 0.1 * jax.random.normal(k_fw, (NCLS, C_OUT), dtype=jnp.float32)
    fc_b = 0.1 * jax.random.normal(k_fb, (NCLS,), dtype=jnp.float32)

    fwd = jax.jit(image_retrieval_net_forward)
    o, cls = fwd(x, conv_w, conv_b, fc_w, fc_b)
    o, cls = jax.block_until_ready(o), jax.block_until_ready(cls)

    o_ref, cls_ref = _reference_forward(x, conv_w, conv_b, fc_w, fc_b)
    assert o.shape == (N, C_OUT) and cls.shape == (N, NCLS)
    assert jnp.allclose(o, o_ref, atol=1e-4, rtol=1e-4)
    assert jnp.allclose(cls, cls_ref, atol=1e-4, rtol=1e-4)

    print("KERNEL_OK")
</pallas_src>

<mosaic_0001>
module attributes {stable_mosaic.version = 11 : i64} {
  func.func @_fused_forward_kernel(%arg0: memref<4x686xf32, #tpu.memory_space<vmem>>, %arg1: memref<32x40xf32, #tpu.memory_space<vmem>>, %arg2: memref<32x1xf32, #tpu.memory_space<vmem>>, %arg3: memref<648x2xf32, #tpu.memory_space<vmem>>, %arg4: memref<8x32xf32, #tpu.memory_space<vmem>>, %arg5: memref<8x1xf32, #tpu.memory_space<vmem>>, %arg6: memref<40x2xf32, #tpu.memory_space<vmem>>, %arg7: memref<40x648xf32, #tpu.memory_space<vmem>>) attributes {dimension_semantics = [], scalar_prefetch = 0 : i64, scratch_operands = 1 : i64, tpu.core_type = #tpu.core_type<tc>} {
    %c0 = arith.constant 0 : index
    %c0_0 = arith.constant 0 : index
    %0 = vector.load %arg0[%c0, %c0_0] : memref<4x686xf32, #tpu.memory_space<vmem>>, vector<4x648xf32>
    %c0_1 = arith.constant 0 : index
    %c0_2 = arith.constant 0 : index
    %1 = vector.load %arg7[%c0_1, %c0_2] : memref<40x648xf32, #tpu.memory_space<vmem>>, vector<4x648xf32>
    tpu.vector_store %arg7[%c0_1, %c0_2], %0 {strides = array<i32>} : memref<40x648xf32, #tpu.memory_space<vmem>>, vector<4x648xf32>,
    %c0_3 = arith.constant 0 : index
    %c1 = arith.constant 1 : index
    %2 = vector.load %arg0[%c0_3, %c1] : memref<4x686xf32, #tpu.memory_space<vmem>>, vector<4x648xf32>
    %c4 = arith.constant 4 : index
    %c0_4 = arith.constant 0 : index
    %3 = vector.load %arg7[%c4, %c0_4] : memref<40x648xf32, #tpu.memory_space<vmem>>, vector<4x648xf32>
    tpu.vector_store %arg7[%c4, %c0_4], %2 {strides = array<i32>} : memref<40x648xf32, #tpu.memory_space<vmem>>, vector<4x648xf32>,
    %c0_5 = arith.constant 0 : index
    %c2 = arith.constant 2 : index
    %4 = vector.load %arg0[%c0_5, %c2] : memref<4x686xf32, #tpu.memory_space<vmem>>, vector<4x648xf32>
    %c8 = arith.constant 8 : index
    %c0_6 = arith.constant 0 : index
    %5 = vector.load %arg7[%c8, %c0_6] : memref<40x648xf32, #tpu.memory_space<vmem>>, vector<4x648xf32>
    tpu.vector_store %arg7[%c8, %c0_6], %4 {strides = array<i32>} : memref<40x648xf32, #tpu.memory_space<vmem>>, vector<4x648xf32>,
    %c0_7 = arith.constant 0 : index
    %c18 = arith.constant 18 : index
    %6 = vector.load %arg0[%c0_7, %c18] : memref<4x686xf32, #tpu.memory_space<vmem>>, vector<4x648xf32>
    %c12 = arith.constant 12 : index
    %c0_8 = arith.constant 0 : index
    %7 = vector.load %arg7[%c12, %c0_8] : memref<40x648xf32, #tpu.memory_space<vmem>>, vector<4x648xf32>
    tpu.vector_store %arg7[%c12, %c0_8], %6 {strides = array<i32>} : memref<40x648xf32, #tpu.memory_space<vmem>>, vector<4x648xf32>,
    %c0_9 = arith.constant 0 : index
    %c19 = arith.constant 19 : index
    %8 = vector.load %arg0[%c0_9, %c19] : memref<4x686xf32, #tpu.memory_space<vmem>>, vector<4x648xf32>
    %c16 = arith.constant 16 : index
    %c0_10 = arith.constant 0 : index
    %9 = vector.load %arg7[%c16, %c0_10] : memref<40x648xf32, #tpu.memory_space<vmem>>, vector<4x648xf32>
    tpu.vector_store %arg7[%c16, %c0_10], %8 {strides = array<i32>} : memref<40x648xf32, #tpu.memory_space<vmem>>, vector<4x648xf32>,
    %c0_11 = arith.constant 0 : index
    %c20 = arith.constant 20 : index
    %10 = vector.load %arg0[%c0_11, %c20] : memref<4x686xf32, #tpu.memory_space<vmem>>, vector<4x648xf32>
    %c20_12 = arith.constant 20 : index
    %c0_13 = arith.constant 0 : index
    %11 = vector.load %arg7[%c20_12, %c0_13] : memref<40x648xf32, #tpu.memory_space<vmem>>, vector<4x648xf32>
    tpu.vector_store %arg7[%c20_12, %c0_13], %10 {strides = array<i32>} : memref<40x648xf32, #tpu.memory_space<vmem>>, vector<4x648xf32>,
    %c0_14 = arith.constant 0 : index
    %c36 = arith.constant 36 : index
    %12 = vector.load %arg0[%c0_14, %c36] : memref<4x686xf32, #tpu.memory_space<vmem>>, vector<4x648xf32>
    %c24 = arith.constant 24 : index
    %c0_15 = arith.constant 0 : index
    %13 = vector.load %arg7[%c24, %c0_15] : memref<40x648xf32, #tpu.memory_space<vmem>>, vector<4x648xf32>
    tpu.vector_store %arg7[%c24, %c0_15], %12 {strides = array<i32>} : memref<40x648xf32, #tpu.memory_space<vmem>>, vector<4x648xf32>,
    %c0_16 = arith.constant 0 : index
    %c37 = arith.constant 37 : index
    %14 = vector.load %arg0[%c0_16, %c37] : memref<4x686xf32, #tpu.memory_space<vmem>>, vector<4x648xf32>
    %c28 = arith.constant 28 : index
    %c0_17 = arith.constant 0 : index
    %15 = vector.load %arg7[%c28, %c0_17] : memref<40x648xf32, #tpu.memory_space<vmem>>, vector<4x648xf32>
    tpu.vector_store %arg7[%c28, %c0_17], %14 {strides = array<i32>} : memref<40x648xf32, #tpu.memory_space<vmem>>, vector<4x648xf32>,
    %c0_18 = arith.constant 0 : index
    %c38 = arith.constant 38 : index
    %16 = vector.load %arg0[%c0_18, %c38] : memref<4x686xf32, #tpu.memory_space<vmem>>, vector<4x648xf32>
    %c32 = arith.constant 32 : index
    %c0_19 = arith.constant 0 : index
    %17 = vector.load %arg7[%c32, %c0_19] : memref<40x648xf32, #tpu.memory_space<vmem>>, vector<4x648xf32>
    tpu.vector_store %arg7[%c32, %c0_19], %16 {strides = array<i32>} : memref<40x648xf32, #tpu.memory_space<vmem>>, vector<4x648xf32>,
    %cst = arith.constant 0.000000e+00 : f32
    %18 = vector.broadcast %cst : f32 to vector<4x648xf32>
    %c36_20 = arith.constant 36 : index
    %c0_21 = arith.constant 0 : index
    %19 = vector.load %arg7[%c36_20, %c0_21] : memref<40x648xf32, #tpu.memory_space<vmem>>, vector<4x648xf32>
    tpu.vector_store %arg7[%c36_20, %c0_21], %18 {strides = array<i32>} : memref<40x648xf32, #tpu.memory_space<vmem>>, vector<4x648xf32>,
    %c0_22 = arith.constant 0 : index
    %c0_23 = arith.constant 0 : index
    %20 = vector.load %arg1[%c0_22, %c0_23] : memref<32x40xf32, #tpu.memory_space<vmem>>, vector<32x40xf32>
    %c0_24 = arith.constant 0 : index
    %c0_25 = arith.constant 0 : index
    %21 = vector.load %arg7[%c0_24, %c0_25] : memref<40x648xf32, #tpu.memory_space<vmem>>, vector<40x648xf32>
    %cst_26 = arith.constant dense<0.000000e+00> : vector<32x648xf32>
    %22 = tpu.matmul %20, %21, %cst_26 {dimension_numbers = #tpu.dot_dimension_numbers<[1], [0], [0], [1], [0, 0, 1, 1], [], []>} : vector<32x40xf32>, vector<40x648xf32>, vector<32x648xf32> -> vector<32x648xf32>
    %c0_27 = arith.constant 0 : index
    %c0_28 = arith.constant 0 : index
    %23 = vector.load %arg2[%c0_27, %c0_28] : memref<32x1xf32, #tpu.memory_space<vmem>>, vector<32x1xf32>
    %24 = vector.broadcast %23 : vector<32x1xf32> to vector<32x648xf32>
    %25 = arith.addf %22, %24 : vector<32x648xf32>
    %cst_29 = arith.constant 0.000000e+00 : f32
    %26 = vector.broadcast %cst_29 : f32 to vector<32x648xf32>
    %27 = arith.maximumf %25, %26 : vector<32x648xf32>
    %c0_30 = arith.constant 0 : index
    %c0_31 = arith.constant 0 : index
    %28 = vector.load %arg3[%c0_30, %c0_31] : memref<648x2xf32, #tpu.memory_space<vmem>>, vector<648x2xf32>
    %cst_32 = arith.constant dense<0.000000e+00> : vector<32x2xf32>
    %29 = tpu.matmul %27, %28, %cst_32 {dimension_numbers = #tpu.dot_dimension_numbers<[1], [0], [0], [1], [0, 0, 1, 1], [], []>} : vector<32x648xf32>, vector<648x2xf32>, vector<32x2xf32> -> vector<32x2xf32>
    %c0_33 = arith.constant 0 : index
    %c0_34 = arith.constant 0 : index
    %30 = vector.load %arg4[%c0_33, %c0_34] : memref<8x32xf32, #tpu.memory_space<vmem>>, vector<8x32xf32>
    %cst_35 = arith.constant dense<0.000000e+00> : vector<8x2xf32>
    %31 = tpu.matmul %30, %29, %cst_35 {dimension_numbers = #tpu.dot_dimension_numbers<[1], [0], [0], [1], [0, 0, 1, 1], [], []>} : vector<8x32xf32>, vector<32x2xf32>, vector<8x2xf32> -> vector<8x2xf32>
    %c0_36 = arith.constant 0 : index
    %c0_37 = arith.constant 0 : index
    %32 = vector.load %arg5[%c0_36, %c0_37] : memref<8x1xf32, #tpu.memory_space<vmem>>, vector<8x1xf32>
    %33 = vector.broadcast %32 : vector<8x1xf32> to vector<8x2xf32>
    %34 = arith.addf %31, %33 : vector<8x2xf32>
    %35 = arith.mulf %29, %29 : vector<32x2xf32>
    %cst_38 = arith.constant dense<0.000000e+00> : vector<2xf32>
    %36 = vector.multi_reduction <add>, %35, %cst_38 [0] : vector<32x2xf32> to vector<2xf32>
    %37 = vector.shape_cast %36 : vector<2xf32> to vector<1x2xf32>
    %38 = math.sqrt %37 : vector<1x2xf32>
    %cst_39 = arith.constant 9.99999997E-7 : f32
    %39 = vector.broadcast %cst_39 : f32 to vector<1x2xf32>
    %40 = arith.addf %38, %39 : vector<1x2xf32>
    %41 = vector.broadcast %40 : vector<1x2xf32> to vector<32x2xf32>
    %42 = arith.divf %29, %41 : vector<32x2xf32>
    %c0_40 = arith.constant 0 : index
    %c0_41 = arith.constant 0 : index
    %43 = vector.load %arg6[%c0_40, %c0_41] : memref<40x2xf32, #tpu.memory_space<vmem>>, vector<32x2xf32>
    tpu.vector_store %arg6[%c0_40, %c0_41], %42 {strides = array<i32>} : memref<40x2xf32, #tpu.memory_space<vmem>>, vector<32x2xf32>,
    %c32_42 = arith.constant 32 : index
    %c0_43 = arith.constant 0 : index
    %44 = vector.load %arg6[%c32_42, %c0_43] : memref<40x2xf32, #tpu.memory_space<vmem>>, vector<8x2xf32>
    tpu.vector_store %arg6[%c32_42, %c0_43], %34 {strides = array<i32>} : memref<40x2xf32, #tpu.memory_space<vmem>>, vector<8x2xf32>,
    return
  }
}

</mosaic_0001>

<bundles_post_ra>
// kernel: image_retrieval_net_forward.1
= control target key start
LH: loop header
LB: loop body
LE: loop exit
PB: predicated region body
PF: predicated region fallthrough
CT: control target
= control target key end

     0   :  { %s1113_s27 = smov 126   ;;  %s1114_s28 = smov 110   ;;  %vm83_vm0 = vcmask 1039360   ;;  %vm226_vm1 = vcmask 891904   ;;  %vm131_vm2 = vcmask 1031168   ;;  %vm179_vm3 = vcmask 900096   ;;  %s1777_s0 = inlined_call_operand.vmem [shape: f32[4,686], index: 0, kind: input, shape index: {}]   ;;  %s1778_s2 = inlined_call_operand.vmem [shape: f32[32,1], index: 2, kind: input, shape index: {}]   ;;  %s1779_s1 = inlined_call_operand.vmem [shape: f32[32,40], index: 1, kind: input, shape index: {}]   ;;  %s1780_s5 = inlined_call_operand.vmem [shape: f32[8,1], index: 5, kind: input, shape index: {}]   ;;  %s1781_s3 = inlined_call_operand.vmem [shape: f32[648,2], index: 3, kind: input, shape index: {}]   ;;  %s1782_s4 = inlined_call_operand.vmem [shape: f32[8,32], index: 4, kind: input, shape index: {}]   ;;  %s1783_s6 = inlined_call_operand.vmem [shape: f32[40,2], index: 6, kind: output, shape index: {}]  }
   0x1   :  { %v1160_v0 = vld [vmem:[%s1777_s0] sm:$0xff]  ;;  %v1165_v1 = vld [vmem:[%s1777_s0 + $0x8] sm:$0xff]  ;;  %v1172_v2 = vld [vmem:[%s1777_s0 + $0x10] sm:$0xff]  ;;  %s1112_s0 = smov 127   ;;  %s1115_s29 = smov 109   ;;  %vm369_vm4 = vcmask 744448  }
   0x2   :  { %29 = vst [vmem:[#allocation1] ss:$2 sm:$0xff] %v1160_v0  ;;  %s1116_s30 = smov 108   ;;  %s1117_s7 = smov 92   ;;  %vm274_vm5 = vcmask 883712   ;;  %vm51_vm6 = vcmask 60416  }
   0x3   :  { %31 = vst [vmem:[#allocation1 + $0x10] ss:$2 sm:$0xff] %v1165_v1  ;;  %s1118_s8 = smov 91   ;;  %s1119_s9 = smov 90   ;;  %vm321_vm7 = vcmask 752640   ;;  %vm416_vm8 = vcmask 736256  }
   0x4   :  { %33 = vst [vmem:[#allocation1 + $0x20] ss:$2 sm:$0xff] %v1172_v2  ;;  %vm100_vm9 = vcmask 64516   ;;  %vm498_vm10 = vcmask 326656   ;;  %vm790_vm11 = vcmask 64512   ;;  %vm1012_vm12 = vcmask 15360  }
   0x5   :  { %vm984_vm13 = vcmask 261120  }
   0x9   :  { %v34_v3 = vld.sshfl [vmem:[#allocation1] sm:$0xff pattern:$0x75316420]  ;;  %v35_v4 = vld.sshfl [vmem:[#allocation1 + $0x8] sm:$0xff pattern:$0x75316420] }
   0xa   :  { %60 = vst [vmem:[#allocation1 + $0x1] ss:$2 sm:$0xff] %v1160_v0  ;;  %v36_v5 = vld.sshfl [vmem:[#allocation1 + $0x10] sm:$0xff pattern:$0x75316420] }
   0xb   :  { %46 = vst [vmem:[#allocation2] sm:$0xf] %v34_v3  ;;  %v37_v6 = vld.sshfl [vmem:[#allocation1 + $0x18] sm:$0xff pattern:$0x75316420] }
   0xc   :  { %47 = vst [vmem:[#allocation2 + $0x8] sm:$0xf] %v35_v4  ;;  %v38_v7 = vld.sshfl [vmem:[#allocation1 + $0x20] sm:$0xff pattern:$0x75316420] }
   0xd   :  { %62 = vst [vmem:[#allocation1 + $0x11] ss:$2 sm:$0xff] %v1165_v1  ;;  %v1177_v8 = vld.sshfl [vmem:[#allocation1 + $0x28] sm:$0xff pattern:$0x75316420] }
   0xe   :  { %48 = vst [vmem:[#allocation2 + $0x10] sm:$0xf] %v36_v5 }
   0xf   :  { %49 = vst [vmem:[#allocation2 + $0x18] sm:$0xf] %v37_v6 }
  0x10   :  { %64 = vst [vmem:[#allocation1 + $0x21] ss:$2 sm:$0xff] %v1172_v2 }
  0x11   :  { %v66_v9 = vld.sshfl [vmem:[#allocation1 + $0x8] sm:$0xff pattern:$0x75316420]  ;;  %v65_v10 = vld.sshfl [vmem:[#allocation1] sm:$0xff pattern:$0x75316420] }
  0x12   :  { %73 = vrot.lane.b32.xlu2 %v66_v9, %s1112_s0  ;;  %71 = vrot.lane.b32.xlu1 %v65_v10, %s1112_s0  ;;  %108 = vst [vmem:[#allocation1] ss:$2 sm:$0xff] %v1160_v0 }
  0x13   :  { %50 = vst [vmem:[#allocation2 + $0x20] sm:$0xf] %v38_v7 }
  0x14   :  { %v67_v11 = vld.sshfl [vmem:[#allocation1 + $0x10] sm:$0xff pattern:$0x75316420]  ;;  %v1183_v12 = vld.sshfl [vmem:[#allocation1 + $0x18] sm:$0xff pattern:$0x75316420] }
  0x15   :  { %110 = vst [vmem:[#allocation1 + $0x10] ss:$2 sm:$0xff] %v1165_v1 }
  0x16   :  { %52 = vst.msk [vmem:[#allocation2 + $0x28] sm:$0xf] %vm51_vm6, %v1177_v8 }
  0x17   :  { %v1186_v13 = vld.sshfl [vmem:[#allocation1 + $0x20] sm:$0xff pattern:$0x75316420]  ;;  %v1188_v14 = vld.sshfl [vmem:[#allocation1 + $0x28] sm:$0xff pattern:$0x75316420] }
  0x18   :  { %112 = vst [vmem:[#allocation1 + $0x20] ss:$2 sm:$0xff] %v1172_v2 }
  0x19   :  { %v113_v15 = vld.sshfl [vmem:[#allocation1] sm:$0xff pattern:$0x75316420]  ;;  %v114_v16 = vld.sshfl [vmem:[#allocation1 + $0x8] sm:$0xff pattern:$0x75316420] }
  0x1a   :  { %75 = vrot.lane.b32.xlu2 %v67_v11, %s1112_s0  ;;  %119 = vrot.lane.b32.xlu1 %v113_v15, %s1113_s27  ;;  %156 = vst [vmem:[#allocation1 + $0x1] ss:$2 sm:$0xff] %v1160_v0 }
  0x1c   :  { %v115_v17 = vld.sshfl [vmem:[#allocation1 + $0x10] sm:$0xff pattern:$0x75316420]  ;;  %v1194_v18 = vld.sshfl [vmem:[#allocation1 + $0x18] sm:$0xff pattern:$0x75316420] }
  0x1d   :  { %123 = vrot.lane.b32.xlu0 %v115_v17, %s1113_s27  ;;  %158 = vst [vmem:[#allocation1 + $0x11] ss:$2 sm:$0xff] %v1165_v1 }
  0x1f   :  { %v1198_v19 = vld.sshfl [vmem:[#allocation1 + $0x20] sm:$0xff pattern:$0x75316420]  ;;  %v1200_v20 = vld.sshfl [vmem:[#allocation1 + $0x28] sm:$0xff pattern:$0x75316420] }
  0x20   :  { %160 = vst [vmem:[#allocation1 + $0x21] ss:$2 sm:$0xff] %v1172_v2 }
  0x21   :  { %v162_v21 = vld.sshfl [vmem:[#allocation1 + $0x8] sm:$0xff pattern:$0x75316420]  ;;  %v161_v22 = vld.sshfl [vmem:[#allocation1] sm:$0xff pattern:$0x75316420] }
  0x22   :  { %121 = vrot.lane.b32.xlu2 %v114_v16, %s1113_s27  ;;  %169 = vrot.lane.b32.xlu1 %v162_v21, %s1114_s28  ;;  %203 = vst [vmem:[#allocation1] ss:$2 sm:$0xff] %v1160_v0 }
  0x24   :  { %v163_v23 = vld.sshfl [vmem:[#allocation1 + $0x10] sm:$0xff pattern:$0x75316420]  ;;  %v1206_v24 = vld.sshfl [vmem:[#allocation1 + $0x18] sm:$0xff pattern:$0x75316420] }
  0x25   :  { %205 = vst [vmem:[#allocation1 + $0x10] ss:$2 sm:$0xff] %v1165_v1  ;;  %167 = vrot.lane.b32.xlu0 %v161_v22, %s1114_s28 }
  0x27   :  { %v1210_v25 = vld.sshfl [vmem:[#allocation1 + $0x20] sm:$0xff pattern:$0x75316420]  ;;  %v1212_v26 = vld.sshfl [vmem:[#allocation1 + $0x28] sm:$0xff pattern:$0x75316420] }
  0x28   :  { %207 = vst [vmem:[#allocation1 + $0x20] ss:$2 sm:$0xff] %v1172_v2 }
  0x29   :  { %v209_v27 = vld.sshfl [vmem:[#allocation1 + $0x8] sm:$0xff pattern:$0x75316420]  ;;  %v208_v28 = vld.sshfl [vmem:[#allocation1] sm:$0xff pattern:$0x75316420] }
  0x2a   :  { %171 = vrot.lane.b32.xlu1 %v163_v23, %s1114_s28  ;;  %216 = vrot.lane.b32.xlu2 %v209_v27, %s1115_s29  ;;  %251 = vst [vmem:[#allocation1 + $0x1] ss:$2 sm:$0xff] %v1160_v0 }
  0x2c   :  { %v211_v29 = vld.sshfl [vmem:[#allocation1 + $0x18] sm:$0xff pattern:$0x75316420]  ;;  %v210_v30 = vld.sshfl [vmem:[#allocation1 + $0x10] sm:$0xff pattern:$0x75316420] }
  0x2d   :  { %253 = vst [vmem:[#allocation1 + $0x11] ss:$2 sm:$0xff] %v1165_v1 }
  0x2f   :  { %v1219_v31 = vld.sshfl [vmem:[#allocation1 + $0x20] sm:$0xff pattern:$0x75316420]  ;;  %v1221_v32 = vld.sshfl [vmem:[#allocation1 + $0x28] sm:$0xff pattern:$0x75316420] }
  0x30   :  { %255 = vst [vmem:[#allocation1 + $0x21] ss:$2 sm:$0xff] %v1172_v2 }
  0x31   :  { %v256_v33 = vld.sshfl [vmem:[#allocation1] sm:$0xff pattern:$0x75316420]  ;;  %v257_v34 = vld.sshfl [vmem:[#allocation1 + $0x8] sm:$0xff pattern:$0x75316420] }
  0x32   :  { %218 = vrot.lane.b32.xlu2 %v210_v30, %s1115_s29  ;;  %214 = vrot.lane.b32.xlu1 %v208_v28, %s1115_s29  ;;  %298 = vst [vmem:[#allocation1] ss:$2 sm:$0xff] %v1160_v0 }
  0x33   :  { %262 = vrot.lane.b32.xlu0 %v256_v33, %s1116_s30 }
  0x34   :  { %v258_v35 = vld.sshfl [vmem:[#allocation1 + $0x10] sm:$0xff pattern:$0x75316420]  ;;  %v259_v36 = vld.sshfl [vmem:[#allocation1 + $0x18] sm:$0xff pattern:$0x75316420] }
  0x35   :  { %300 = vst [vmem:[#allocation1 + $0x10] ss:$2 sm:$0xff] %v1165_v1 }
  0x37   :  { %v1229_v37 = vld.sshfl [vmem:[#allocation1 + $0x20] sm:$0xff pattern:$0x75316420]  ;;  %v261_v38 = vld.sshfl [vmem:[#allocation1 + $0x28] sm:$0xff pattern:$0x75316420] }
  0x38   :  { %302 = vst [vmem:[#allocation1 + $0x20] ss:$2 sm:$0xff] %v1172_v2 }
  0x39   :  { %v303_v39 = vld.sshfl [vmem:[#allocation1] sm:$0xff pattern:$0x75316420]  ;;  %v304_v40 = vld.sshfl [vmem:[#allocation1 + $0x8] sm:$0xff pattern:$0x75316420] }
  0x3a   :  { %264 = vrot.lane.b32.xlu1 %v257_v34, %s1116_s30  ;;  %346 = vst [vmem:[#allocation1 + $0x1] ss:$2 sm:$0xff] %v1160_v0 }
  0x3b   :  { %266 = vrot.lane.b32.xlu0 %v258_v35, %s1116_s30 }
  0x3c   :  { %v305_v41 = vld.sshfl [vmem:[#allocation1 + $0x10] sm:$0xff pattern:$0x75316420]  ;;  %v306_v42 = vld.sshfl [vmem:[#allocation1 + $0x18] sm:$0xff pattern:$0x75316420] }
  0x3d   :  { %313 = vrot.lane.b32.xlu2 %v305_v41, %s1117_s7  ;;  %348 = vst [vmem:[#allocation1 + $0x11] ss:$2 sm:$0xff] %v1165_v1 }
  0x3f   :  { %v307_v43 = vld.sshfl [vmem:[#allocation1 + $0x20] sm:$0xff pattern:$0x75316420]  ;;  %v308_v44 = vld.sshfl [vmem:[#allocation1 + $0x28] sm:$0xff pattern:$0x75316420] }
  0x40   :  { %350 = vst [vmem:[#allocation1 + $0x21] ss:$2 sm:$0xff] %v1172_v2 }
  0x41   :  { %v351_v45 = vld.sshfl [vmem:[#allocation1] sm:$0xff pattern:$0x75316420]  ;;  %v352_v46 = vld.sshfl [vmem:[#allocation1 + $0x8] sm:$0xff pattern:$0x75316420] }
  0x42   :  { %309 = vrot.lane.b32.xlu1 %v303_v39, %s1117_s7  ;;  %393 = vst [vmem:[#allocation1] ss:$2 sm:$0xff] %v1160_v0 }
  0x44   :  { %v353_v47 = vld.sshfl [vmem:[#allocation1 + $0x10] sm:$0xff pattern:$0x75316420]  ;;  %v354_v48 = vld.sshfl [vmem:[#allocation1 + $0x18] sm:$0xff pattern:$0x75316420] }
  0x45   :  { %361 = vrot.lane.b32.xlu0 %v353_v47, %s1118_s8  ;;  %357 = vrot.lane.b32.xlu2 %v351_v45, %s1118_s8  ;;  %395 = vst [vmem:[#allocation1 + $0x10] ss:$2 sm:$0xff] %v1165_v1 }
  0x47   :  { %v355_v49 = vld.sshfl [vmem:[#allocation1 + $0x20] sm:$0xff pattern:$0x75316420]  ;;  %v356_v50 = vld.sshfl [vmem:[#allocation1 + $0x28] sm:$0xff pattern:$0x75316420] }
  0x48   :  { %397 = vst [vmem:[#allocation1 + $0x20] ss:$2 sm:$0xff] %v1172_v2 }
  0x49   :  { %v398_v51 = vld.sshfl [vmem:[#allocation1] sm:$0xff pattern:$0x75316420]  ;;  %v399_v52 = vld.sshfl [vmem:[#allocation1 + $0x8] sm:$0xff pattern:$0x75316420] }
  0x4a   :  { %311 = vrot.lane.b32.xlu1 %v304_v40, %s1117_s7 }
  0x4c   :  { %v400_v53 = vld.sshfl [vmem:[#allocation1 + $0x10] sm:$0xff pattern:$0x75316420]  ;;  %v401_v54 = vld.sshfl [vmem:[#allocation1 + $0x18] sm:$0xff pattern:$0x75316420] }
  0x4d   :  { %359 = vrot.lane.b32.xlu2 %v352_v46, %s1118_s8  ;;  %404 = vrot.lane.b32.xlu0 %v398_v51, %s1119_s9 }
  0x4f   :  { %v403_v55 = vld.sshfl [vmem:[#allocation1 + $0x28] sm:$0xff pattern:$0x75316420]  ;;  %v402_v56 = vld.sshfl [vmem:[#allocation1 + $0x20] sm:$0xff pattern:$0x75316420] }
  0x52   :  { %315 = vrot.lane.b32.xlu1 %v306_v42, %s1117_s7 }
  0x55   :  { %363 = vrot.lane.b32.xlu2 %v354_v48, %s1118_s8  ;;  %406 = vrot.lane.b32.xlu0 %v399_v52, %s1119_s9  ;;  %v1121_v48 = vmov 0  }
  0x56   :  { %1105 = vset.pattern.permute.xlu0 %v1121_v48  ;;  %1106 = vset.pattern.permute.xlu1 %v1121_v48 }
  0x57   :  { %1107 = vset.pattern.permute.xlu2 %v1121_v48 }
  0x5a   :  { %220 = vrot.lane.b32.xlu1 %v211_v29, %s1115_s29 }
  0x5d   :  { %268 = vrot.lane.b32.xlu2 %v259_v36, %s1116_s30  ;;  %408 = vrot.lane.b32.xlu0 %v400_v53, %s1119_s9  ;;  %v474_v53 = vld [vmem:[%s1778_s2] sm:$0xff] }
  0x62   :  { %365 = vrot.lane.b32.xlu1 %v355_v49, %s1118_s8 }
  0x65   :  { %410 = vrot.lane.b32.xlu0 %v401_v54, %s1119_s9  ;;  %414 = vrot.lane.b32.xlu2 %v403_v55, %s1119_s9 }
  0x6a   :  { %173 = vrot.lane.b32.xlu1 %v1206_v24, %s1114_s28 }
  0x6c   :  { %v74_v57 = vpop.permute.xlu2 %73 }
  0x6d   :  { %412 = vrot.lane.b32.xlu0 %v402_v56, %s1119_s9  ;;  %222 = vrot.lane.b32.xlu2 %v1219_v31, %s1115_s29  ;;  %v1338_v56 = vld [vmem:[%s1779_s1] sm:$0xff] }
  0x72   :  { %319 = vrot.lane.b32.xlu1 %v308_v44, %s1117_s7 }
  0x74   :  { %v1256_v58 = vpop.permute.xlu2 %75 }
  0x75   :  { %317 = vrot.lane.b32.xlu0 %v307_v43, %s1117_s7  ;;  %v85_v59 = vsel %vm83_vm0, %v74_v57, %v1256_v58  ;;  %367 = vrot.lane.b32.xlu2 %v356_v50, %s1118_s8 }
  0x76   :  { %96 = vst [vmem:[#allocation2 + $0x8] sm:$0xf0] %v85_v59 }
  0x7a   :  { %127 = vrot.lane.b32.xlu1 %v1198_v19, %s1113_s27  ;;  %v1120_v19 = vmov 0.0  }
  0x7b   :  { %434 = vst [vmem:[#allocation2 + $0xc0] sm:$0xf0] %v1120_v19 }
  0x7c   :  { %v122_v60 = vpop.permute.xlu2 %121  ;;  %435 = vst [vmem:[#allocation2 + $0xc8] sm:$0xf0] %v1120_v19 }
  0x7d   :  { %125 = vrot.lane.b32.xlu0 %v1194_v18, %s1113_s27  ;;  %175 = vrot.lane.b32.xlu2 %v1210_v25, %s1114_s28  ;;  %436 = vst [vmem:[#allocation2 + $0xd0] sm:$0xf0] %v1120_v19 }
  0x7e   :  { %437 = vst [vmem:[#allocation2 + $0xd8] sm:$0xf0] %v1120_v19 }
  0x7f   :  { %438 = vst [vmem:[#allocation2 + $0xe0] sm:$0xf0] %v1120_v19 }
  0x80   :  { %439 = vst.msk [vmem:[#allocation2 + $0xe8] sm:$0xf0] %vm100_vm9, %v1120_v19 }
  0x82   :  { %272 = vrot.lane.b32.xlu1 %v261_v38, %s1116_s30 }
  0x84   :  { %v72_v61 = vpop.permute.xlu1 %71  ;;  %v217_v62 = vpop.permute.xlu2 %216 }
  0x85   :  { %270 = vrot.lane.b32.xlu0 %v1229_v37, %s1116_s30  ;;  %v84_v63 = vsel %vm83_vm0, %v72_v61, %v74_v57  ;;  %79 = vrot.lane.b32.xlu2 %v1186_v13, %s1112_s0 }
  0x86   :  { %95 = vst [vmem:[#allocation2] sm:$0xf0] %v84_v63  ;;  %v475_v63 = vld [vmem:[%s1778_s2 + $0x8] sm:$0xff] }
  0x8a   :  { %177 = vrot.lane.b32.xlu1 %v1212_v26, %s1114_s28 }
  0x8c   :  { %v120_v0 = vpop.permute.xlu1 %119  ;;  %v1276_v1 = vpop.permute.xlu2 %218 }
  0x8d   :  { %77 = vrot.lane.b32.xlu0 %v1183_v12, %s1112_s0  ;;  %v132_v2 = vsel %vm131_vm2, %v120_v0, %v122_v60  ;;  %v228_v3 = vsel %vm226_vm1, %v217_v62, %v1276_v1  ;;  %81 = vrot.lane.b32.xlu2 %v1188_v14, %s1112_s0  ;;  %v444_v59 = vld [vmem:[#allocation2] sm:$0xff] }
  0x8e   :  { %143 = vst [vmem:[#allocation2 + $0x30] sm:$0xf] %v132_v2 }
  0x8f   :  { %239 = vst [vmem:[#allocation2 + $0x68] sm:$0xf] %v228_v3  ;;  %v1285_v4 = vpop.permute.xlu0 %123 }
  0x90   :  { %v133_v5 = vsel %vm131_vm2, %v122_v60, %v1285_v4 }
  0x91   :  { %144 = vst [vmem:[#allocation2 + $0x38] sm:$0xf] %v133_v5 }
  0x92   :  { %485 = vperm.xlu1 %1106, %v475_v63  }
  0x94   :  { %v170_v6 = vpop.permute.xlu1 %169 }
  0x95   :  { %224 = vrot.lane.b32.xlu0 %v1221_v32, %s1115_s29 }
  0x97   :  { %v314_v7 = vpop.permute.xlu2 %313  ;;  %v168_v9 = vpop.permute.xlu0 %167 }
  0x98   :  { %v180_v10 = vsel %vm179_vm3, %v168_v9, %v170_v6 }
  0x99   :  { %191 = vst [vmem:[#allocation2 + $0x30] sm:$0xf0] %v180_v10 }
  0x9c   :  { %v1292_v11 = vpop.permute.xlu1 %171 }
  0x9d   :  { %129 = vrot.lane.b32.xlu0 %v1200_v20, %s1113_s27  ;;  %v181_v12 = vsel %vm179_vm3, %v170_v6, %v1292_v11 }
  0x9e   :  { %192 = vst [vmem:[#allocation2 + $0x38] sm:$0xf0] %v181_v12  ;;  %v445_v12 = vld [vmem:[#allocation2 + $0x8] sm:$0xff] }
  0x9f   :  { %v358_v13 = vpop.permute.xlu2 %357 }
  0xa0   :  { %v450_v54 = vld [vmem:[#allocation2 + $0x30] sm:$0xff] }
  0xa4   :  { %v215_v14 = vpop.permute.xlu1 %214 }
  0xa5   :  { %v227_v15 = vsel %vm226_vm1, %v215_v14, %v217_v62  ;;  %v263_v16 = vpop.permute.xlu0 %262  ;;  %480 = vperm.xlu0 %1105, %v474_v53   ;;  %v451_v5 = vld [vmem:[#allocation2 + $0x38] sm:$0xff] }
  0xa6   :  { %238 = vst [vmem:[#allocation2 + $0x60] sm:$0xf] %v227_v15 }
  0xa7   :  { %v360_v17 = vpop.permute.xlu2 %359 }
  0xa8   :  { %v370_v18 = vsel %vm369_vm4, %v358_v13, %v360_v17 }
  0xa9   :  { %381 = vst [vmem:[#allocation2 + $0x90] sm:$0xf0] %v370_v18 }
  0xac   :  { %v265_v21 = vpop.permute.xlu1 %264 }
  0xad   :  { %v275_v20 = vsel %vm274_vm5, %v263_v16, %v265_v21  ;;  %v267_v22 = vpop.permute.xlu0 %266 }
  0xae   :  { %286 = vst [vmem:[#allocation2 + $0x60] sm:$0xf0] %v275_v20  ;;  %v276_v23 = vsel %vm274_vm5, %v265_v21, %v267_v22 }
  0xaf   :  { %287 = vst [vmem:[#allocation2 + $0x68] sm:$0xf0] %v276_v23  ;;  %v364_v24 = vpop.permute.xlu2 %363 }
  0xb4   :  { %v310_v25 = vpop.permute.xlu1 %309 }
  0xb5   :  { %v456_v49 = vld [vmem:[#allocation2 + $0x60] sm:$0xff] }
  0xb6   :  { %v457_v0 = vld [vmem:[#allocation2 + $0x68] sm:$0xff] }
  0xb7   :  { %v362_v26 = vpop.permute.xlu0 %361  ;;  %v1302_v27 = vpop.permute.xlu2 %268 }
  0xb8   :  { %v371_v28 = vsel %vm369_vm4, %v360_v17, %v362_v26  ;;  %v372_v29 = vsel %vm369_vm4, %v362_v26, %v364_v24  ;;  %v277_v30 = vsel %vm274_vm5, %v267_v22, %v1302_v27  ;;  %v1373_v22 = vld [vmem:[%s1779_s1 + $0x10] sm:$0xff]  ;;  %v477_v26 = vld [vmem:[%s1778_s2 + $0x18] sm:$0xff] }
  0xb9   :  { %382 = vst [vmem:[#allocation2 + $0x98] sm:$0xf0] %v371_v28  ;;  %495 = vperm.xlu1 %1106, %v477_v26   ;;  %v726_v26 = vld [vmem:[%s1781_s3 + $0x88] sm:$0xff] }
  0xba   :  { %383 = vst [vmem:[#allocation2 + $0xa0] sm:$0xf0] %v372_v29 }
  0xbb   :  { %288 = vst [vmem:[#allocation2 + $0x70] sm:$0xf0] %v277_v30 }
  0xbc   :  { %v312_v31 = vpop.permute.xlu1 %311 }
  0xbd   :  { %v322_v32 = vsel %vm321_vm7, %v310_v25, %v312_v31  ;;  %v323_v33 = vsel %vm321_vm7, %v312_v31, %v314_v7 }
  0xbe   :  { %333 = vst [vmem:[#allocation2 + $0x90] sm:$0xf] %v322_v32 }
  0xbf   :  { %334 = vst [vmem:[#allocation2 + $0x98] sm:$0xf] %v323_v33  ;;  %v405_v34 = vpop.permute.xlu0 %404  ;;  %v1312_v8 = vpop.permute.xlu2 %414 }
  0xc0   :  { %433 = vst.msk [vmem:[#allocation2 + $0xe8] sm:$0xf] %vm51_vm6, %v1312_v8 }
  0xc4   :  { %v1316_v35 = vpop.permute.xlu1 %315 }
  0xc5   :  { %v324_v36 = vsel %vm321_vm7, %v314_v7, %v1316_v35  ;;  %v462_v47 = vld [vmem:[#allocation2 + $0x90] sm:$0xff]  ;;  %v1355_v7 = vld [vmem:[%s1779_s1 + $0x8] sm:$0xff] }
  0xc6   :  { %335 = vst [vmem:[#allocation2 + $0xa0] sm:$0xf] %v324_v36  ;;  %v463_v62 = vld [vmem:[#allocation2 + $0x98] sm:$0xff] }
  0xc7   :  { %v407_v37 = vpop.permute.xlu0 %406  ;;  %v1320_v38 = vpop.permute.xlu2 %222  ;;  %v473_v13 = vld [vmem:[#allocation2 + $0xe8] sm:$0xff] }
  0xc8   :  { %v417_v39 = vsel %vm416_vm8, %v405_v34, %v407_v37  ;;  %v1391_v34 = vld [vmem:[%s1779_s1 + $0x18] sm:$0xff] }
  0xc9   :  { %428 = vst [vmem:[#allocation2 + $0xc0] sm:$0xf] %v417_v39 }
  0xcc   :  { %v221_v40 = vpop.permute.xlu1 %220 }
  0xcd   :  { %v229_v41 = vsel %vm226_vm1, %v1276_v1, %v221_v40  ;;  %v230_v42 = vsel %vm226_vm1, %v221_v40, %v1320_v38  ;;  %v464_v15 = vld [vmem:[#allocation2 + $0xa0] sm:$0xff] }
  0xce   :  { %240 = vst [vmem:[#allocation2 + $0x70] sm:$0xf] %v229_v41  ;;  %v476_v41 = vld [vmem:[%s1778_s2 + $0x10] sm:$0xff] }
  0xcf   :  { %v409_v43 = vpop.permute.xlu0 %408  ;;  %241 = vst [vmem:[#allocation2 + $0x78] sm:$0xf] %v230_v42  ;;  %v368_v44 = vpop.permute.xlu2 %367  ;;  %490 = vperm.xlu2 %1107, %v476_v41   ;;  %v788_v41 = vld [vmem:[%s1781_s3 + $0x278] sm:$0xff] }
  0xd0   :  { %v418_v45 = vsel %vm416_vm8, %v407_v37, %v409_v43  ;;  %v468_v46 = vld [vmem:[#allocation2 + $0xc0] sm:$0xff]  ;;  %386 = vst.msk [vmem:[#allocation2 + $0xb8] sm:$0xf0] %vm100_vm9, %v368_v44 }
  0xd1   :  { %429 = vst [vmem:[#allocation2 + $0xc8] sm:$0xf] %v418_v45  ;;  %522 = vmatpush.msra.mxu0 %v468_v46 }
  0xd3   :  { %523 = vmatpush.msra.mxu0 %v462_v47 }
  0xd4   :  { %v366_v50 = vpop.permute.xlu1 %365 }
  0xd5   :  { %524 = vmatpush.msra.mxu0 %v456_v49  ;;  %v373_v51 = vsel %vm369_vm4, %v364_v24, %v366_v50  ;;  %v374_v52 = vsel %vm369_vm4, %v366_v50, %v368_v44  ;;  %v458_v16 = vld [vmem:[#allocation2 + $0x70] sm:$0xff] }
  0xd6   :  { %384 = vst [vmem:[#allocation2 + $0xa8] sm:$0xf0] %v373_v51 }
  0xd7   :  { %525 = vmatpush.msra.mxu0 %v450_v54  ;;  %v411_v55 = vpop.permute.xlu0 %410  ;;  %385 = vst [vmem:[#allocation2 + $0xb0] sm:$0xf0] %v374_v52  ;;  %v1341_v61 = vpop.permute.xlu2 %175  ;;  %v724_v54 = vld [vmem:[%s1781_s3 + $0x78] sm:$0xff] }
  0xd8   :  { %v419_v57 = vsel %vm416_vm8, %v409_v43, %v411_v55  ;;  %v469_v60 = vld [vmem:[#allocation2 + $0xc8] sm:$0xff] }
  0xd9   :  { %430 = vst [vmem:[#allocation2 + $0xd0] sm:$0xf] %v419_v57  ;;  %526 = vmatpush.msra.mxu0 %v444_v59  ;;  %551 = vmatpush.msra.mxu1 %v469_v60  ;;  %v723_v57 = vld [vmem:[%s1781_s3 + $0x70] sm:$0xff]  ;;  %v722_v60 = vld [vmem:[%s1781_s3 + $0x68] sm:$0xff] }
  0xda   :  { %1066 = vmatmul.msk.f32.vlgmr.msra.gmra.mxu0 %vm498_vm10, %v1338_v56  ;;  %v739_v59 = vld [vmem:[%s1781_s3 + $0xf0] sm:$0xff] }
  0xdb   :  { %552 = vmatpush.msra.mxu1 %v463_v62 }
  0xdc   :  { %v174_v1 = vpop.permute.xlu1 %173 }
  0xdd   :  { %553 = vmatpush.msra.mxu1 %v457_v0  ;;  %v182_v2 = vsel %vm179_vm3, %v1292_v11, %v174_v1  ;;  %v183_v3 = vsel %vm179_vm3, %v174_v1, %v1341_v61  ;;  %v738_v1 = vld [vmem:[%s1781_s3 + $0xe8] sm:$0xff] }
  0xde   :  { %193 = vst [vmem:[#allocation2 + $0x40] sm:$0xf0] %v182_v2  ;;  %v721_v2 = vld [vmem:[%s1781_s3 + $0x60] sm:$0xff] }
  0xdf   :  { %554 = vmatpush.msra.mxu1 %v451_v5  ;;  %v413_v6 = vpop.permute.xlu0 %412  ;;  %194 = vst [vmem:[#allocation2 + $0x48] sm:$0xf0] %v183_v3  ;;  %v1360_v14 = vpop.permute.xlu2 %79  ;;  %v737_v3 = vld [vmem:[%s1781_s3 + $0xe0] sm:$0xff]  ;;  %v720_v5 = vld [vmem:[%s1781_s3 + $0x58] sm:$0xff] }
  0xe0   :  { %v420_v9 = vsel %vm416_vm8, %v411_v55, %v413_v6  ;;  %v421_v10 = vsel %vm416_vm8, %v413_v6, %v1312_v8  ;;  %v470_v11 = vld [vmem:[#allocation2 + $0xd0] sm:$0xff] }
  0xe1   :  { %431 = vst [vmem:[#allocation2 + $0xd8] sm:$0xf] %v420_v9  ;;  %555 = vmatpush.msra.mxu1 %v445_v12  ;;  %580 = vmatpush.msra.mxu2 %v470_v11  ;;  %v740_v55 = vld [vmem:[%s1781_s3 + $0xf8] sm:$0xff]  ;;  %v719_v9 = vld [vmem:[%s1781_s3 + $0x50] sm:$0xff]  ;;  %v717_v12 = vld [vmem:[%s1781_s3 + $0x40] sm:$0xff] }
  0xe2   :  { %432 = vst [vmem:[#allocation2 + $0xe0] sm:$0xf] %v421_v10  ;;  %1070 = vmatmul.msk.f32.vlgmr.msra.gmra.mxu1 %vm498_vm10, %v1338_v56  ;;  %1067 = vmatmul.msk.f32.gmra.mxu0 %vm498_vm10, %v1355_v7  ;;  %v736_v6 = vld [vmem:[%s1781_s3 + $0xd8] sm:$0xff]  ;;  %v735_v10 = vld [vmem:[%s1781_s3 + $0xd0] sm:$0xff]  ;;  %v734_v11 = vld [vmem:[%s1781_s3 + $0xc8] sm:$0xff] }
  0xe3   :  { %581 = vmatpush.msra.mxu2 %v464_v15  ;;  %667 = vmatpush.msrb.mxu1 %v473_v13  ;;  %v716_v13 = vld [vmem:[%s1781_s3 + $0x38] sm:$0xff]  ;;  %v715_v15 = vld [vmem:[%s1781_s3 + $0x30] sm:$0xff] }
  0xe4   :  { %v320_v17 = vpop.permute.xlu1 %319 }
  0xe5   :  { %582 = vmatpush.msra.mxu2 %v458_v16  ;;  %338 = vst.msk [vmem:[#allocation2 + $0xb8] sm:$0xf] %vm51_vm6, %v320_v17  ;;  %v714_v16 = vld [vmem:[%s1781_s3 + $0x28] sm:$0xff] }
  0xe7   :  { %v318_v18 = vpop.permute.xlu0 %317  ;;  %v82_v24 = vpop.permute.xlu2 %81 }
  0xe8   :  { %v325_v19 = vsel %vm321_vm7, %v1316_v35, %v318_v18  ;;  %v326_v21 = vsel %vm321_vm7, %v318_v18, %v320_v17  ;;  %v471_v20 = vld [vmem:[#allocation2 + $0xd8] sm:$0xff]  ;;  %v88_v25 = vsel %vm83_vm0, %v1360_v14, %v82_v24  ;;  %101 = vst.msk [vmem:[#allocation2 + $0x28] sm:$0xf0] %vm100_vm9, %v82_v24  ;;  %v731_v17 = vld [vmem:[%s1781_s3 + $0xb0] sm:$0xff] }
  0xe9   :  { %336 = vst [vmem:[#allocation2 + $0xa8] sm:$0xf] %v325_v19  ;;  %609 = vmatpush.msra.mxu3 %v471_v20  ;;  %v472_v23 = vld [vmem:[#allocation2 + $0xe0] sm:$0xff]  ;;  %v713_v18 = vld [vmem:[%s1781_s3 + $0x20] sm:$0xff]  ;;  %v727_v24 = vld [vmem:[%s1781_s3 + $0x90] sm:$0xff] }
  0xea   :  { %337 = vst [vmem:[#allocation2 + $0xb0] sm:$0xf] %v326_v21  ;;  %638 = vmatpush.msrb.mxu0 %v472_v23  ;;  %1071 = vmatmul.msk.f32.gmra.mxu1 %vm498_vm10, %v1355_v7  ;;  %v730_v19 = vld [vmem:[%s1781_s3 + $0xa8] sm:$0xff]  ;;  %v712_v21 = vld [vmem:[%s1781_s3 + $0x18] sm:$0xff]  ;;  %v729_v20 = vld [vmem:[%s1781_s3 + $0xa0] sm:$0xff] }
  0xeb   :  { %1068 = vmatmul.msk.f32.gmra.mxu0 %vm498_vm10, %v1373_v22  ;;  %99 = vst [vmem:[#allocation2 + $0x20] sm:$0xf0] %v88_v25  ;;  %v711_v23 = vld [vmem:[%s1781_s3 + $0x10] sm:$0xff]  ;;  %v710_v25 = vld [vmem:[%s1781_s3 + $0x8] sm:$0xff] }
  0xec   :  { %v128_v28 = vpop.permute.xlu1 %127  ;;  %v467_v29 = vld [vmem:[#allocation2 + $0xb8] sm:$0xff] }
  0xed   :  { %668 = vmatpush.msrb.mxu1 %v467_v29  ;;  %v725_v29 = vld [vmem:[%s1781_s3 + $0x80] sm:$0xff] }
  0xef   :  { %v126_v30 = vpop.permute.xlu0 %125  ;;  %v449_v62 = vld [vmem:[#allocation2 + $0x28] sm:$0xff] }
  0xf0   :  { %v134_v31 = vsel %vm131_vm2, %v1285_v4, %v126_v30  ;;  %v135_v32 = vsel %vm131_vm2, %v126_v30, %v128_v28  ;;  %v465_v33 = vld [vmem:[#allocation2 + $0xa8] sm:$0xff]  ;;  %v756_v30 = vld [vmem:[%s1781_s3 + $0x178] sm:$0xff] }
  0xf1   :  { %145 = vst [vmem:[#allocation2 + $0x40] sm:$0xf] %v134_v31  ;;  %610 = vmatpush.msra.mxu3 %v465_v33  ;;  %v466_v8 = vld [vmem:[#allocation2 + $0xb0] sm:$0xff]  ;;  %v771_v33 = vld [vmem:[%s1781_s3 + $0x1f0] sm:$0xff] }
  0xf2   :  { %146 = vst [vmem:[#allocation2 + $0x48] sm:$0xf] %v135_v32  ;;  %639 = vmatpush.msrb.mxu0 %v466_v8  ;;  %1072 = vmatmul.msk.f32.gmra.mxu1 %vm498_vm10, %v1373_v22  ;;  %v448_v0 = vld [vmem:[#allocation2 + $0x20] sm:$0xff]  ;;  %v772_v31 = vld [vmem:[%s1781_s3 + $0x1f8] sm:$0xff]  ;;  %v755_v32 = vld [vmem:[%s1781_s3 + $0x170] sm:$0xff] }
  0xf3   :  { %1069 = vmatmul.msk.f32.gmra.mxu0 %vm498_vm10, %v1391_v34  ;;  %v770_v8 = vld [vmem:[%s1781_s3 + $0x1e8] sm:$0xff] }
  0xf4   :  { %v273_v4 = vpop.permute.xlu1 %272 }
  0xf5   :  { %291 = vst.msk [vmem:[#allocation2 + $0x88] sm:$0xf0] %vm100_vm9, %v273_v4 }
  0xf7   :  { %v271_v35 = vpop.permute.xlu0 %270 }
  0xf8   :  { %v278_v36 = vsel %vm274_vm5, %v1302_v27, %v271_v35  ;;  %v279_v37 = vsel %vm274_vm5, %v271_v35, %v273_v4  ;;  %v452_v39 = vld [vmem:[#allocation2 + $0x40] sm:$0xff]  ;;  %v753_v4 = vld [vmem:[%s1781_s3 + $0x160] sm:$0xff] }
  0xf9   :  { %289 = vst [vmem:[#allocation2 + $0x78] sm:$0xf0] %v278_v36  ;;  %583 = vmatpush.msra.mxu2 %v452_v39  ;;  %v453_v46 = vld [vmem:[#allocation2 + $0x48] sm:$0xff]  ;;  %v769_v35 = vld [vmem:[%s1781_s3 + $0x1e0] sm:$0xff]  ;;  %v752_v36 = vld [vmem:[%s1781_s3 + $0x158] sm:$0xff] }
  0xfa   :  { %290 = vst [vmem:[#allocation2 + $0x80] sm:$0xf0] %v279_v37  ;;  %1073 = vmatmul.msk.f32.gmra.mxu1 %vm498_vm10, %v1391_v34  ;;  %v768_v37 = vld [vmem:[%s1781_s3 + $0x1d8] sm:$0xff]  ;;  %v751_v39 = vld [vmem:[%s1781_s3 + $0x150] sm:$0xff] }
  0xfc   :  { %v178_v40 = vpop.permute.xlu1 %177 }
  0xfd   :  { %v184_v42 = vsel %vm179_vm3, %v1341_v61, %v178_v40  ;;  %196 = vst.msk [vmem:[#allocation2 + $0x58] sm:$0xf0] %vm100_vm9, %v178_v40  ;;  %v767_v40 = vld [vmem:[%s1781_s3 + $0x1d0] sm:$0xff] }
  0xfe   :  { %195 = vst [vmem:[#allocation2 + $0x50] sm:$0xf0] %v184_v42 }
  0xff   :  { %v78_v27 = vpop.permute.xlu0 %77 }
 0x100   :  { %v86_v43 = vsel %vm83_vm0, %v1256_v58, %v78_v27  ;;  %v87_v44 = vsel %vm83_vm0, %v78_v27, %v1360_v14  ;;  %v459_v45 = vld [vmem:[#allocation2 + $0x78] sm:$0xff]  ;;  %v750_v27 = vld [vmem:[%s1781_s3 + $0x148] sm:$0xff] }
 0x101   :  { %97 = vst [vmem:[#allocation2 + $0x10] sm:$0xf0] %v86_v43  ;;  %611 = vmatpush.msra.mxu3 %v459_v45  ;;  %v978_v58 = vld [vmem:[%s1780_s5] sm:$0xff]  ;;  %v766_v43 = vld [vmem:[%s1781_s3 + $0x1c8] sm:$0xff] }
 0x102   :  { %98 = vst [vmem:[#allocation2 + $0x18] sm:$0xf0] %v87_v44  ;;  %981 = vperm.xlu2 %1107, %v978_v58   ;;  %v733_v14 = vld [vmem:[%s1781_s3 + $0xc0] sm:$0xff]  ;;  %v764_v58 = vld [vmem:[%s1781_s3 + $0x1b8] sm:$0xff] }
 0x103   :  { %612 = vmatpush.msra.mxu3 %v453_v46 }
 0x107   :  { %v225_v47 = vpop.permute.xlu0 %224 }
 0x108   :  { %v231_v48 = vsel %vm226_vm1, %v1320_v38, %v225_v47  ;;  %243 = vst.msk [vmem:[#allocation2 + $0x88] sm:$0xf] %vm51_vm6, %v225_v47  ;;  %v446_v49 = vld [vmem:[#allocation2 + $0x10] sm:$0xff]  ;;  %v749_v47 = vld [vmem:[%s1781_s3 + $0x140] sm:$0xff] }
 0x109   :  { %242 = vst [vmem:[#allocation2 + $0x80] sm:$0xf] %v231_v48  ;;  %584 = vmatpush.msra.mxu2 %v446_v49  ;;  %v447_v50 = vld [vmem:[#allocation2 + $0x18] sm:$0xff]  ;;  %v787_v49 = vld [vmem:[%s1781_s3 + $0x270] sm:$0xff] }
 0x10a   :  { %613 = vmatpush.msra.mxu3 %v447_v50  ;;  %1074 = vmatmul.msk.f32.vlgmr.msra.gmra.mxu2 %vm498_vm10, %v1338_v56  ;;  %v765_v48 = vld [vmem:[%s1781_s3 + $0x1c0] sm:$0xff]  ;;  %v748_v50 = vld [vmem:[%s1781_s3 + $0x138] sm:$0xff] }
 0x10b   :  { %1078 = vmatmul.msk.f32.vlgmr.msra.gmra.mxu3 %vm498_vm10, %v1338_v56  ;;  %803 = vmatpush.msrb.mxu2 %v724_v54  ;;  %v785_v54 = vld [vmem:[%s1781_s3 + $0x260] sm:$0xff] }
 0x10c   :  { %832 = vmatpush.msrb.mxu3 %v740_v55  ;;  %v746_v55 = vld [vmem:[%s1781_s3 + $0x128] sm:$0xff] }
 0x10d   :  { %804 = vmatpush.msrb.mxu2 %v723_v57 }
 0x10e   :  { %833 = vmatpush.msrb.mxu3 %v739_v59 }
 0x10f   :  { %v130_v51 = vpop.permute.xlu0 %129  ;;  %v461_v38 = vld [vmem:[#allocation2 + $0x88] sm:$0xff]  ;;  %805 = vmatpush.msrb.mxu2 %v722_v60  ;;  %v762_v60 = vld [vmem:[%s1781_s3 + $0x1a8] sm:$0xff] }
 0x110   :  { %v136_v52 = vsel %vm131_vm2, %v128_v28, %v130_v51  ;;  %148 = vst.msk [vmem:[#allocation2 + $0x58] sm:$0xf] %vm51_vm6, %v130_v51  ;;  %669 = vmatpush.msrb.mxu1 %v461_v38  ;;  %v460_v53 = vld [vmem:[#allocation2 + $0x80] sm:$0xff]  ;;  %834 = vmatpush.msrb.mxu3 %v738_v1  ;;  %v709_v28 = vld [vmem:[%s1781_s3] sm:$0xff]  ;;  %v747_v38 = vld [vmem:[%s1781_s3 + $0x130] sm:$0xff] }
 0x111   :  { %147 = vst [vmem:[#allocation2 + $0x50] sm:$0xf] %v136_v52  ;;  %640 = vmatpush.msrb.mxu0 %v460_v53  ;;  %806 = vmatpush.msrb.mxu2 %v721_v2  ;;  %v786_v51 = vld [vmem:[%s1781_s3 + $0x268] sm:$0xff]  ;;  %v1618_v52 = vpop.permute.xlu1 %485  ;;  %v763_v53 = vld [vmem:[%s1781_s3 + $0x1b0] sm:$0xff] }
 0x112   :  { %1075 = vmatmul.msk.f32.gmra.mxu2 %vm498_vm10, %v1355_v7  ;;  %835 = vmatpush.msrb.mxu3 %v737_v3  ;;  %v761_v3 = vld [vmem:[%s1781_s3 + $0x1a0] sm:$0xff] }
 0x113   :  { %1079 = vmatmul.msk.f32.gmra.mxu3 %vm498_vm10, %v1355_v7  ;;  %807 = vmatpush.msrb.mxu2 %v720_v5  ;;  %v783_v5 = vld [vmem:[%s1781_s3 + $0x250] sm:$0xff] }
 0x114   :  { %836 = vmatpush.msrb.mxu3 %v736_v6  ;;  %v744_v6 = vld [vmem:[%s1781_s3 + $0x118] sm:$0xff] }
 0x115   :  { %808 = vmatpush.msrb.mxu2 %v719_v9  ;;  %v760_v9 = vld [vmem:[%s1781_s3 + $0x198] sm:$0xff] }
 0x116   :  { %837 = vmatpush.msrb.mxu3 %v735_v10 }
 0x117   :  { %v455_v61 = vld [vmem:[#allocation2 + $0x58] sm:$0xff]  ;;  %v1588_v42 = vpop.permute.xlu0 %480 }
 0x118   :  { %670 = vmatpush.msrb.mxu1 %v455_v61  ;;  %v454_v63 = vld [vmem:[#allocation2 + $0x50] sm:$0xff]  ;;  %838 = vmatpush.msrb.mxu3 %v734_v11 }
 0x119   :  { %641 = vmatpush.msrb.mxu0 %v454_v63  ;;  %v784_v63 = vld [vmem:[%s1781_s3 + $0x258] sm:$0xff] }
 0x11a   :  { %1076 = vmatmul.msk.f32.gmra.mxu2 %vm498_vm10, %v1373_v22  ;;  %671 = vmatpush.msrb.mxu1 %v449_v62 }
 0x11b   :  { %1080 = vmatmul.msk.f32.gmra.mxu3 %vm498_vm10, %v1373_v22  ;;  %642 = vmatpush.msrb.mxu0 %v448_v0  ;;  %v745_v0 = vld [vmem:[%s1781_s3 + $0x120] sm:$0xff] }
 0x11c   :  { %1086 = vmatmul.msk.f32.vlgmr.msrb.gmra.mxu1 %vm498_vm10, %v1338_v56  ;;  %1082 = vmatmul.msk.f32.vlgmr.msrb.gmra.mxu0 %vm498_vm10, %v1338_v56  ;;  %v718_v56 = vld [vmem:[%s1781_s3 + $0x48] sm:$0xff] }
 0x11d   :  { %809 = vmatpush.msrb.mxu2 %v718_v56  ;;  %839 = vmatpush.msrb.mxu3 %v733_v14  ;;  %v782_v56 = vld [vmem:[%s1781_s3 + $0x248] sm:$0xff] }
 0x11e   :  { %861 = vmatpush.msra.mxu0 %v756_v30  ;;  %890 = vmatpush.msra.mxu1 %v772_v31  ;;  %v779_v30 = vld [vmem:[%s1781_s3 + $0x230] sm:$0xff] }
 0x11f   :  { %810 = vmatpush.msrb.mxu2 %v717_v12 }
 0x120   :  { %862 = vmatpush.msra.mxu0 %v755_v32  ;;  %891 = vmatpush.msra.mxu1 %v771_v33  ;;  %v778_v33 = vld [vmem:[%s1781_s3 + $0x228] sm:$0xff] }
 0x121   :  { %811 = vmatpush.msrb.mxu2 %v716_v13 }
 0x122   :  { %1077 = vmatmul.msk.f32.gmra.mxu2 %vm498_vm10, %v1391_v34  ;;  %892 = vmatpush.msra.mxu1 %v770_v8 }
 0x123   :  { %1081 = vmatmul.msk.f32.gmra.mxu3 %vm498_vm10, %v1391_v34  ;;  %812 = vmatpush.msrb.mxu2 %v715_v15 }
 0x124   :  { %1087 = vmatmul.msk.f32.gmra.mxu1 %vm498_vm10, %v1355_v7  ;;  %1083 = vmatmul.msk.f32.gmra.mxu0 %vm498_vm10, %v1355_v7  ;;  %v732_v7 = vld [vmem:[%s1781_s3 + $0xb8] sm:$0xff] }
 0x125   :  { %840 = vmatpush.msrb.mxu3 %v732_v7  ;;  %813 = vmatpush.msrb.mxu2 %v714_v16 }
 0x126   :  { %893 = vmatpush.msra.mxu1 %v769_v35  ;;  %v776_v35 = vld [vmem:[%s1781_s3 + $0x218] sm:$0xff] }
 0x127   :  { %841 = vmatpush.msrb.mxu3 %v731_v17  ;;  %814 = vmatpush.msrb.mxu2 %v713_v18  ;;  %v743_v17 = vld [vmem:[%s1781_s3 + $0x110] sm:$0xff] }
 0x128   :  { %894 = vmatpush.msra.mxu1 %v768_v37  ;;  %v759_v18 = vld [vmem:[%s1781_s3 + $0x190] sm:$0xff] }
 0x129   :  { %842 = vmatpush.msrb.mxu3 %v730_v19  ;;  %815 = vmatpush.msrb.mxu2 %v712_v21  ;;  %v1655_v10 = vpop.permute.xlu2 %490  ;;  %v781_v19 = vld [vmem:[%s1781_s3 + $0x240] sm:$0xff]  ;;  %v775_v37 = vld [vmem:[%s1781_s3 + $0x210] sm:$0xff] }
 0x12a   :  { %895 = vmatpush.msra.mxu1 %v767_v40  ;;  %v774_v40 = vld [vmem:[%s1781_s3 + $0x208] sm:$0xff] }
 0x12b   :  { %843 = vmatpush.msrb.mxu3 %v729_v20  ;;  %816 = vmatpush.msrb.mxu2 %v711_v23  ;;  %v1659_v16 = vpop.permute.xlu1 %495  ;;  %v742_v23 = vld [vmem:[%s1781_s3 + $0x108] sm:$0xff] }
 0x12c   :  { %1088 = vmatmul.msk.f32.gmra.mxu1 %vm498_vm10, %v1373_v22  ;;  %1084 = vmatmul.msk.f32.gmra.mxu0 %vm498_vm10, %v1373_v22  ;;  %v728_v22 = vld [vmem:[%s1781_s3 + $0x98] sm:$0xff] }
 0x12d   :  { %844 = vmatpush.msrb.mxu3 %v728_v22  ;;  %817 = vmatpush.msrb.mxu2 %v710_v25  ;;  %v780_v25 = vld [vmem:[%s1781_s3 + $0x238] sm:$0xff] }
 0x12e   :  { %896 = vmatpush.msra.mxu1 %v766_v43 }
 0x12f   :  { %845 = vmatpush.msrb.mxu3 %v727_v24  ;;  %818 = vmatpush.msrb.mxu2 %v709_v28  ;;  %v758_v24 = vld [vmem:[%s1781_s3 + $0x188] sm:$0xff]  ;;  %v741_v28 = vld [vmem:[%s1781_s3 + $0x100] sm:$0xff] }
 0x130   :  { %897 = vmatpush.msra.mxu1 %v765_v48 }
 0x131   :  { %846 = vmatpush.msrb.mxu3 %v726_v26  ;;  %919 = vmatpush.msra.mxu2 %v788_v41  ;;  %v773_v41 = vld [vmem:[%s1781_s3 + $0x200] sm:$0xff] }
 0x132   :  { %898 = vmatpush.msra.mxu1 %v764_v58 }
 0x133   :  { %847 = vmatpush.msrb.mxu3 %v725_v29  ;;  %920 = vmatpush.msra.mxu2 %v787_v49  ;;  %v757_v29 = vld [vmem:[%s1781_s3 + $0x180] sm:$0xff] }
 0x134   :  { %1089 = vmatmul.msk.f32.gmra.mxu1 %vm498_vm10, %v1391_v34  ;;  %1085 = vmatmul.msk.f32.gmra.mxu0 %vm498_vm10, %v1391_v34  ;;  %v754_v34 = vld [vmem:[%s1781_s3 + $0x168] sm:$0xff] }
 0x135   :  { %863 = vmatpush.msra.mxu0 %v754_v34  ;;  %921 = vmatpush.msra.mxu2 %v786_v51  ;;  %v777_v34 = vld [vmem:[%s1781_s3 + $0x220] sm:$0xff] }
 0x136   :  { %899 = vmatpush.msra.mxu1 %v763_v53 }
 0x137   :  { %864 = vmatpush.msra.mxu0 %v753_v4  ;;  %922 = vmatpush.msra.mxu2 %v785_v54 }
 0x138   :  { %900 = vmatpush.msra.mxu1 %v762_v60 }
 0x139   :  { %865 = vmatpush.msra.mxu0 %v752_v36  ;;  %923 = vmatpush.msra.mxu2 %v784_v63 }
 0x13a   :  { %901 = vmatpush.msra.mxu1 %v761_v3 }
 0x13b   :  { %866 = vmatpush.msra.mxu0 %v751_v39  ;;  %924 = vmatpush.msra.mxu2 %v783_v5  ;;  %v789_v39 = vld [vmem:[%s1781_s3 + $0x280] sm:$0xff] }
 0x13c   :  { %902 = vmatpush.msra.mxu1 %v760_v9  ;;  %963 = vmatpush.msra.mxu3 %v789_v39 }
 0x13d   :  { %867 = vmatpush.msra.mxu0 %v750_v27  ;;  %925 = vmatpush.msra.mxu2 %v782_v56 }
 0x13e   :  { %903 = vmatpush.msra.mxu1 %v759_v18 }
 0x13f   :  { %868 = vmatpush.msra.mxu0 %v749_v47  ;;  %926 = vmatpush.msra.mxu2 %v781_v19 }
 0x140   :  { %904 = vmatpush.msra.mxu1 %v758_v24 }
 0x141   :  { %869 = vmatpush.msra.mxu0 %v748_v50  ;;  %927 = vmatpush.msra.mxu2 %v780_v25 }
 0x142   :  { %905 = vmatpush.msra.mxu1 %v757_v29 }
 0x143   :  { %870 = vmatpush.msra.mxu0 %v747_v38  ;;  %928 = vmatpush.msra.mxu2 %v779_v30 }
 0x145   :  { %871 = vmatpush.msra.mxu0 %v746_v55  ;;  %929 = vmatpush.msra.mxu2 %v778_v33 }
 0x147   :  { %872 = vmatpush.msra.mxu0 %v745_v0  ;;  %930 = vmatpush.msra.mxu2 %v777_v34 }
 0x149   :  { %873 = vmatpush.msra.mxu0 %v744_v6  ;;  %931 = vmatpush.msra.mxu2 %v776_v35 }
 0x14b   :  { %874 = vmatpush.msra.mxu0 %v743_v17  ;;  %932 = vmatpush.msra.mxu2 %v775_v37 }
 0x14d   :  { %875 = vmatpush.msra.mxu0 %v742_v23  ;;  %933 = vmatpush.msra.mxu2 %v774_v40 }
 0x14f   :  { %876 = vmatpush.msra.mxu0 %v741_v28  ;;  %934 = vmatpush.msra.mxu2 %v773_v41 }
 0x157   :  { %v528_v44 = vpop.f32.mrf.mxu0 }
 0x158   :  { %v529_v45 = vadd.f32 %v528_v44, %v1588_v42 }
 0x15a   :  { %v685_v46 = vmax.f32 %v529_v45, 0.0 }
 0x15c   :  { %819 = vmatmul.f32.vlgmr.msrb.gmra.mxu2 %v685_v46 }
 0x15f   :  { %v557_v57 = vpop.f32.mrf.mxu1  ;;  %v531_v59 = vpop.f32.mrf.mxu0 }
 0x160   :  { %v558_v61 = vadd.f32 %v557_v57, %v1588_v42  ;;  %v532_v62 = vadd.f32 %v531_v59, %v1618_v52 }
 0x162   :  { %v686_v1 = vmax.f32 %v558_v61, 0.0  ;;  %v691_v2 = vmax.f32 %v532_v62, 0.0 }
 0x164   :  { %848 = vmatmul.f32.vlgmr.msrb.gmra.mxu3 %v686_v1  ;;  %822 = vmatmul.f32.gmra.mxu2 %v691_v2 }
 0x167   :  { %v560_v12 = vpop.f32.mrf.mxu1 }
 0x168   :  { %v561_v11 = vadd.f32 %v560_v12, %v1618_v52  ;;  %v534_v13 = vpop.f32.mrf.mxu0 }
 0x169   :  { %v535_v14 = vadd.f32 %v534_v13, %v1655_v10 }
 0x16a   :  { %v692_v15 = vmax.f32 %v561_v11, 0.0 }
 0x16b   :  { %v697_v7 = vmax.f32 %v535_v14, 0.0 }
 0x16c   :  { %851 = vmatmul.f32.gmra.mxu3 %v692_v15 }
 0x16d   :  { %825 = vmatmul.f32.gmra.mxu2 %v697_v7 }
 0x16f   :  { %v563_v21 = vpop.f32.mrf.mxu1 }
 0x170   :  { %v564_v20 = vadd.f32 %v563_v21, %v1655_v10  ;;  %v537_v22 = vpop.f32.mrf.mxu0 }
 0x171   :  { %v538_v26 = vadd.f32 %v537_v22, %v1659_v16 }
 0x172   :  { %v698_v31 = vmax.f32 %v564_v20, 0.0 }
 0x173   :  { %v703_v32 = vmax.f32 %v538_v26, 0.0 }
 0x174   :  { %854 = vmatmul.f32.gmra.mxu3 %v698_v31 }
 0x175   :  { %828 = vmatmul.f32.gmra.mxu2 %v703_v32 }
 0x177   :  { %v566_v8 = vpop.f32.mrf.mxu1 }
 0x178   :  { %v567_v4 = vadd.f32 %v566_v8, %v1659_v16 }
 0x17a   :  { %v704_v36 = vmax.f32 %v567_v4, 0.0 }
 0x17c   :  { %857 = vmatmul.f32.gmra.mxu3 %v704_v36 }
 0x18d   :  { %v586_v27 = vpop.f32.mrf.mxu2 }
 0x18e   :  { %v587_v43 = vadd.f32 %v586_v27, %v1588_v42  ;;  %v615_v44 = vpop.f32.mrf.mxu3 }
 0x18f   :  { %v616_v45 = vadd.f32 %v615_v44, %v1588_v42 }
 0x190   :  { %v687_v46 = vmax.f32 %v587_v43, 0.0 }
 0x191   :  { %v688_v47 = vmax.f32 %v616_v45, 0.0 }
 0x192   :  { %877 = vmatmul.f32.vlgmr.msra.gmra.mxu0 %v687_v46 }
 0x193   :  { %906 = vmatmul.f32.vlgmr.msra.gmra.mxu1 %v688_v47 }
 0x195   :  { %v589_v48 = vpop.f32.mrf.mxu2 }
 0x196   :  { %v590_v49 = vadd.f32 %v589_v48, %v1618_v52  ;;  %v618_v50 = vpop.f32.mrf.mxu3 }
 0x197   :  { %v619_v58 = vadd.f32 %v618_v50, %v1618_v52 }
 0x198   :  { %v693_v51 = vmax.f32 %v590_v49, 0.0 }
 0x199   :  { %v694_v38 = vmax.f32 %v619_v58, 0.0  ;;  %v673_v53 = vpop.f32.mrf.mxu1  ;;  %v644_v54 = vpop.f32.mrf.mxu0 }
 0x19a   :  { %v674_v55 = vadd.f32 %v673_v53, %v1588_v42  ;;  %v645_v57 = vadd.f32 %v644_v54, %v1588_v42  ;;  %880 = vmatmul.f32.gmra.mxu0 %v693_v51 }
 0x19b   :  { %909 = vmatmul.f32.gmra.mxu1 %v694_v38 }
 0x19c   :  { %v690_v59 = vmax.f32 %v674_v55, 0.0  ;;  %v689_v60 = vmax.f32 %v645_v57, 0.0 }
 0x19d   :  { %v592_v61 = vpop.f32.mrf.mxu2 }
 0x19e   :  { %v593_v62 = vadd.f32 %v592_v61, %v1655_v10  ;;  %v621_v63 = vpop.f32.mrf.mxu3  ;;  %1090 = vmatmul.msk.f32.vlgmr.msra.gmra.mxu3 %vm790_vm11, %v690_v59  ;;  %935 = vmatmul.f32.vlgmr.msra.gmra.mxu2 %v689_v60 }
 0x19f   :  { %v622_v0 = vadd.f32 %v621_v63, %v1655_v10 }
 0x1a0   :  { %v699_v1 = vmax.f32 %v593_v62, 0.0 }
 0x1a1   :  { %v700_v2 = vmax.f32 %v622_v0, 0.0  ;;  %v676_v3 = vpop.f32.mrf.mxu1  ;;  %v647_v5 = vpop.f32.mrf.mxu0 }
 0x1a2   :  { %v677_v42 = vadd.f32 %v676_v3, %v1618_v52  ;;  %v648_v6 = vadd.f32 %v647_v5, %v1618_v52  ;;  %883 = vmatmul.f32.gmra.mxu0 %v699_v1 }
 0x1a3   :  { %912 = vmatmul.f32.gmra.mxu1 %v700_v2 }
 0x1a4   :  { %v696_v9 = vmax.f32 %v677_v42, 0.0  ;;  %v695_v56 = vmax.f32 %v648_v6, 0.0 }
 0x1a5   :  { %v595_v12 = vpop.f32.mrf.mxu2 }
 0x1a6   :  { %v596_v11 = vadd.f32 %v595_v12, %v1659_v16  ;;  %v624_v13 = vpop.f32.mrf.mxu3  ;;  %1091 = vmatmul.msk.f32.gmra.mxu3 %vm790_vm11, %v696_v9  ;;  %938 = vmatmul.f32.gmra.mxu2 %v695_v56 }
 0x1a7   :  { %v625_v14 = vadd.f32 %v624_v13, %v1659_v16 }
 0x1a8   :  { %v705_v15 = vmax.f32 %v596_v11, 0.0 }
 0x1a9   :  { %v706_v7 = vmax.f32 %v625_v14, 0.0  ;;  %v679_v17 = vpop.f32.mrf.mxu1  ;;  %v650_v18 = vpop.f32.mrf.mxu0 }
 0x1aa   :  { %v680_v19 = vadd.f32 %v679_v17, %v1655_v10  ;;  %v651_v52 = vadd.f32 %v650_v18, %v1655_v10  ;;  %886 = vmatmul.f32.gmra.mxu0 %v705_v15 }
 0x1ab   :  { %915 = vmatmul.f32.gmra.mxu1 %v706_v7 }
 0x1ac   :  { %v702_v21 = vmax.f32 %v680_v19, 0.0  ;;  %v701_v20 = vmax.f32 %v651_v52, 0.0  ;;  %v977_v52 = vld [vmem:[%s1782_s4] sm:$0xff] }
 0x1ae   :  { %1092 = vmatmul.msk.f32.gmra.mxu3 %vm790_vm11, %v702_v21  ;;  %941 = vmatmul.f32.gmra.mxu2 %v701_v20 }
 0x1b1   :  { %v682_v22 = vpop.f32.mrf.mxu1  ;;  %v653_v23 = vpop.f32.mrf.mxu0 }
 0x1b2   :  { %v683_v24 = vadd.f32 %v682_v22, %v1659_v16  ;;  %v654_v25 = vadd.f32 %v653_v23, %v1659_v16 }
 0x1b4   :  { %v708_v26 = vmax.f32 %v683_v24, 0.0  ;;  %v707_v28 = vmax.f32 %v654_v25, 0.0 }
 0x1b6   :  { %1093 = vmatmul.msk.f32.gmra.mxu3 %vm790_vm11, %v708_v26  ;;  %944 = vmatmul.f32.gmra.mxu2 %v707_v28 }
 0x1df   :  { %v820_v29 = vpop.f32.mrf.mxu2 }
 0x1e7   :  { %v849_v10 = vpop.f32.mrf.mxu3  ;;  %v823_v30 = vpop.f32.mrf.mxu2 }
 0x1e8   :  { %v850_v27 = vadd.f32 %v849_v10, %v820_v29 }
 0x1ef   :  { %v852_v31 = vpop.f32.mrf.mxu3 }
 0x1f0   :  { %v826_v32 = vpop.f32.mrf.mxu2  ;;  %v853_v16 = vadd.f32 %v852_v31, %v823_v30 }
 0x1f7   :  { %v855_v33 = vpop.f32.mrf.mxu3 }
 0x1f8   :  { %v829_v8 = vpop.f32.mrf.mxu2  ;;  %v856_v46 = vadd.f32 %v855_v33, %v826_v32 }
 0x1ff   :  { %v858_v4 = vpop.f32.mrf.mxu3 }
 0x200   :  { %v859_v59 = vadd.f32 %v858_v4, %v829_v8 }
 0x20f   :  { %v878_v34 = vpop.f32.mrf.mxu0 }
 0x210   :  { %v907_v35 = vpop.f32.mrf.mxu1  ;;  %v879_v47 = vadd.f32 %v878_v34, %v850_v27 }
 0x212   :  { %v908_v58 = vadd.f32 %v907_v35, %v879_v47 }
 0x217   :  { %v881_v36 = vpop.f32.mrf.mxu0 }
 0x218   :  { %v910_v40 = vpop.f32.mrf.mxu1  ;;  %v882_v43 = vadd.f32 %v881_v36, %v853_v16 }
 0x21a   :  { %v911_v48 = vadd.f32 %v910_v40, %v882_v43 }
 0x21f   :  { %v884_v41 = vpop.f32.mrf.mxu0 }
 0x220   :  { %v885_v49 = vadd.f32 %v884_v41, %v856_v46  ;;  %v913_v50 = vpop.f32.mrf.mxu1 }
 0x221   :  { %v965_v37 = vpop.f32.mrf.mxu3  ;;  %v936_v39 = vpop.f32.mrf.mxu2 }
 0x222   :  { %v914_v38 = vadd.f32 %v913_v50, %v885_v49  ;;  %v937_v53 = vadd.f32 %v936_v39, %v908_v58  ;;  %v982_v49 = vpop.permute.xlu2 %981 }
 0x224   :  { %v1734_v62 = vadd.f32 %v965_v37, %v937_v53 }
 0x226   :  { %v1008_v3 = vmul.f32 %v1734_v62, %v1734_v62 }
 0x227   :  { %v887_v54 = vpop.f32.mrf.mxu0 }
 0x228   :  { %v888_v63 = vadd.f32 %v887_v54, %v859_v59  ;;  %v916_v2 = vpop.f32.mrf.mxu1  ;;  %v1013_v11 = vsel %vm1012_vm12, %v1008_v3, 0.0 }
 0x229   :  { %v968_v44 = vpop.f32.mrf.mxu3  ;;  %v939_v45 = vpop.f32.mrf.mxu2 }
 0x22a   :  { %v940_v51 = vadd.f32 %v939_v45, %v911_v48  ;;  %v917_v5 = vadd.f32 %v916_v2, %v888_v63 }
 0x22c   :  { %v1732_v60 = vadd.f32 %v968_v44, %v940_v51 }
 0x22e   :  { %v1009_v1 = vmul.f32 %v1732_v60, %v1732_v60 }
 0x230   :  { %v1014_v9 = vsel %vm1012_vm12, %v1009_v1, 0.0 }
 0x231   :  { %v971_v55 = vpop.f32.mrf.mxu3  ;;  %v942_v57 = vpop.f32.mrf.mxu2  ;;  %v1015_v15 = vadd.f32 %v1014_v9, %v1013_v11 }
 0x232   :  { %v943_v61 = vadd.f32 %v942_v57, %v914_v38 }
 0x234   :  { %v1736_v0 = vadd.f32 %v971_v55, %v943_v61 }
 0x236   :  { %v1010_v42 = vmul.f32 %v1736_v0, %v1736_v0 }
 0x238   :  { %v1016_v13 = vsel %vm1012_vm12, %v1010_v42, 0.0 }
 0x239   :  { %v945_v6 = vpop.f32.mrf.mxu2  ;;  %v974_v12 = vpop.f32.mrf.mxu3  ;;  %v1017_v17 = vadd.f32 %v1016_v13, %v1015_v15 }
 0x23a   :  { %v946_v56 = vadd.f32 %v945_v6, %v917_v5 }
 0x23c   :  { %v975_v14 = vadd.f32 %v974_v12, %v946_v56 }
 0x23e   :  { %v1011_v7 = vmul.f32 %v975_v14, %v975_v14  ;;  %1000 = vmatpush.msrb.mxu0 %v975_v14 }
 0x240   :  { %v1018_v18 = vsel %vm1012_vm12, %v1011_v7, 0.0  ;;  %1001 = vmatpush.msrb.mxu0 %v1736_v0 }
 0x241   :  { %v1019_v19 = vadd.f32 %v1018_v18, %v1017_v17 }
 0x242   :  { %1002 = vmatpush.msrb.mxu0 %v1732_v60 }
 0x243   :  { %v1020_v21 = vrot.slane %v1019_v19, 4 }
 0x244   :  { %1003 = vmatpush.msrb.mxu0 %v1734_v62 }
 0x245   :  { %v1021_v20 = vadd.f32 %v1020_v21, %v1019_v19  ;;  %1094 = vmatmul.msk.f32.vlgmr.msrb.gmra.mxu0 %vm984_vm13, %v977_v52 }
 0x247   :  { %v1022_v22 = vrot.slane %v1021_v20, 2 }
 0x249   :  { %v1023_v23 = vadd.f32 %v1022_v22, %v1021_v20 }
 0x24b   :  { %v1024_v24 = vrot.slane %v1023_v23, 1 }
 0x24d   :  { %v1025_v25 = vadd.f32 %v1024_v24, %v1023_v23 }
 0x24f   :  { %1108 = vrsqrt.f32 %v1025_v25  ;;  %vm1033_vm14 = vcmp.eq.f32.partialorder %v1025_v25, inf  ;;  %v1036_v33 = vand.u32 2147483648, %v1025_v25  ;;  %vm1035_vm15 = vcmp.eq.f32.partialorder %v1025_v25, 0.0 }
 0x255   :  { %v1109_v26 = vpop.eup %1108 }
 0x256   :  { %v1027_v28 = vmul.f32 %v1109_v26, %v1025_v25 }
 0x258   :  { %v1028_v29 = vmul.f32 %v1109_v26, %v1027_v28 }
 0x25a   :  { %v1029_v10 = vmul.f32 0.5, %v1028_v29 }
 0x25c   :  { %v1030_v30 = vsub.f32 1.5, %v1029_v10 }
 0x25e   :  { %v1031_v31 = vmul.f32 %v1109_v26, %v1030_v30 }
 0x260   :  { %v1032_v32 = vmul.f32 %v1031_v31, %v1025_v25 }
 0x262   :  { %v1034_v34 = vsel %vm1033_vm14, %v1025_v25, %v1032_v32 }
 0x263   :  { %v1037_v8 = vsel %vm1035_vm15, %v1036_v33, %v1034_v34 }
 0x264   :  { %v1038_v4 = vadd.f32 1e-06, %v1037_v8 }
 0x266   :  { %1110 = vrcp.f32 %v1038_v4  ;;  %v1050_v39 = vand.u32 2147483648, %v1038_v4  ;;  %v1048_v16 = vand.u32 2147483647, %v1038_v4  ;;  %vm1044_vm1 = vweird.f32 %v1038_v4 }
 0x268   :  { %v1051_v27 = vor.u32 1.1754944e-38, %v1050_v39  ;;  %vm1049_vm3 = vcmp.eq.f32.partialorder %v1048_v16, 8.507059e+37 }
 0x26c   :  { %v1111_v35 = vpop.eup %1110 }
 0x26d   :  { %v1040_v36 = vmul.f32 %v1111_v35, %v1038_v4  ;;  %vm1045_vm0 = vweird.f32 %v1111_v35 }
 0x26e   :  { %vm1046_vm2 = vmor %vm1044_vm1, %vm1045_vm0 }
 0x26f   :  { %v1041_v37 = vsub.f32 1.0, %v1040_v36 }
 0x271   :  { %v1042_v40 = vmul.f32 %v1111_v35, %v1041_v37 }
 0x273   :  { %v1043_v41 = vadd.f32 %v1111_v35, %v1042_v40 }
 0x275   :  { %v1047_v43 = vsel %vm1046_vm2, %v1111_v35, %v1043_v41 }
 0x276   :  { %v1052_v44 = vsel %vm1049_vm3, %v1051_v27, %v1047_v43 }
 0x277   :  { %v1053_v45 = vmul.f32 %v1052_v44, %v1734_v62  ;;  %v1054_v46 = vmul.f32 %v1052_v44, %v1732_v60  ;;  %v1055_v47 = vmul.f32 %v1052_v44, %v1736_v0  ;;  %v1056_v48 = vmul.f32 %v1052_v44, %v975_v14 }
 0x279   :  { %1057 = vst.msk [vmem:[%s1783_s6] sm:$0xff] %vm1012_vm12, %v1053_v45 }
 0x27a   :  { %1058 = vst.msk [vmem:[%s1783_s6 + $0x8] sm:$0xff] %vm1012_vm12, %v1054_v46 }
 0x27b   :  { %1059 = vst.msk [vmem:[%s1783_s6 + $0x10] sm:$0xff] %vm1012_vm12, %v1055_v47 }
 0x27c   :  { %1060 = vst.msk [vmem:[%s1783_s6 + $0x18] sm:$0xff] %vm1012_vm12, %v1056_v48 }
 0x2c2   :  { %v1005_v50 = vpop.f32.mrf.mxu0 }
 0x2c3   :  { %v1006_v58 = vadd.f32 %v1005_v50, %v982_v49 }
 0x2c5   :  { %1061 = vst.msk [vmem:[%s1783_s6 + $0x20] sm:$0xff] %vm1012_vm12, %v1006_v58 }

</bundles_post_ra>
